<compile_context>
chip_gen: v7x
topology: tpu7x:2x2x1
jax: 0.10.0
libtpu: 0.0.40
codegen_flags: <defaults>
</compile_context>

<pallas_src>
import functools

import jax
import jax.numpy as jnp
from jax.experimental import pallas as pl
from jax.experimental.pallas import tpu as pltpu

_LANES = 128
_MAX_TILE_ROWS = 4096  # (4096,128) f32 tile = 2 MiB/input; 8 MiB double-buffered.


def _row_granularity(dtype) -> int:
    # Sublane granularity so block rows respect packed-dtype tiling
    # (f32/int32 -> 8, bf16/f16 -> 16, int8/fp8/bool -> 32).
    return max(8, 32 // max(1, jnp.dtype(dtype).itemsize))


def _dice_partial_kernel(x_ref, t_ref, inter_ref, union_ref, *,
                         n_valid, tile_rows, mask_last):
    i = pl.program_id(0)

    x = x_ref[...].astype(jnp.float32)
    t = t_ref[...].astype(jnp.float32)
    s = jax.nn.sigmoid(x)  # EUP transcendental; its slot is otherwise idle.

    def emit(s_v, t_v):
        rows, lanes = s_v.shape
        # Fold the tile down to a single (8, lanes) vreg per quantity with
        # pure VPU adds; the reshape is tile-aligned (rows % 8 == 0) so it is
        # a view, not a VMEM copy.  Cross-lane reduction happens once, outside.
        inter_ref[0] = (s_v * t_v).reshape(rows // 8, 8, lanes).sum(axis=0)
        union_ref[0] = (s_v + t_v).reshape(rows // 8, 8, lanes).sum(axis=0)

    if mask_last:
        last = pl.num_programs(0) - 1

        @pl.when(i < last)
        def _():
            emit(s, t)

        @pl.when(i == last)
        def _():
            # Mask padded / out-of-bounds elements of the ragged tail (covers
            # both element padding and a partial final row-block).
            row_ids = jax.lax.broadcasted_iota(jnp.int32, s.shape, 0)
            lane_ids = jax.lax.broadcasted_iota(jnp.int32, s.shape, 1)
            elem = (i * tile_rows + row_ids) * s.shape[1] + lane_ids
            m = elem < n_valid
            emit(jnp.where(m, s, 0.0), jnp.where(m, t, 0.0))
    else:
        emit(s, t)


def dice_loss(inputs, targets, smooth=1.0):
    """Pallas TPU implementation of DiceLoss.forward. Returns a scalar f32."""
    x = inputs.reshape(-1)
    t = targets.reshape(-1)
    n = x.shape[0]

    gran = max(_row_granularity(x.dtype), _row_granularity(t.dtype))
    chunk = gran * _LANES
    n_pad = -(-n // chunk) * chunk
    if n_pad != n:
        # Only materialized for ragged sizes; padded elements are masked
        # in-kernel so their values are irrelevant.
        x = jnp.pad(x, (0, n_pad - n))
        t = jnp.pad(t, (0, n_pad - n))

    rows = n_pad // _LANES
    x2 = x.reshape(rows, _LANES)
    t2 = t.reshape(rows, _LANES)

    tile_rows = min(_MAX_TILE_ROWS, rows)
    num_steps = -(-rows // tile_rows)
    mask_last = (n != n_pad) or (rows % tile_rows != 0)

    inter_part, union_part = pl.pallas_call(
        functools.partial(
            _dice_partial_kernel,
            n_valid=n,
            tile_rows=tile_rows,
            mask_last=mask_last,
        ),
        out_shape=(
            jax.ShapeDtypeStruct((num_steps, 8, _LANES), jnp.float32),
            jax.ShapeDtypeStruct((num_steps, 8, _LANES), jnp.float32),
        ),
        grid=(num_steps,),
        in_specs=[
            pl.BlockSpec((tile_rows, _LANES), lambda i: (i, 0)),
            pl.BlockSpec((tile_rows, _LANES), lambda i: (i, 0)),
        ],
        out_specs=(
            pl.BlockSpec((1, 8, _LANES), lambda i: (i, 0, 0)),
            pl.BlockSpec((1, 8, _LANES), lambda i: (i, 0, 0)),
        ),
        compiler_params=pltpu.CompilerParams(
            dimension_semantics=("parallel",),
        ),
    )(x2, t2)

    # Tiny epilogue (a few KiB) in plain JAX: combine per-step partial sums
    # and apply the dice formula.
    intersection = jnp.sum(inter_part)
    union = jnp.sum(union_part)
    smooth = jnp.float32(smooth)
    return 1.0 - (2.0 * intersection + smooth) / (union + smooth)


def _dice_loss_ref(inputs, targets, smooth=1.0):
    s = jax.nn.sigmoid(inputs.astype(jnp.float32))
    t = targets.astype(jnp.float32)
    inter = jnp.sum(s * t)
    union = jnp.sum(s) + jnp.sum(t)
    return 1.0 - (2.0 * inter + smooth) / (union + smooth)


if __name__ == "__main__":
    key = jax.random.PRNGKey(0)
    k1, k2, k3, k4 = jax.random.split(key, 4)

    # NCHW-style logits and binary targets (exactly divisible case).
    x = jax.random.normal(k1, (2, 4, 16, 16), dtype=jnp.float32)
    t = (jax.random.uniform(k2, (2, 4, 16, 16)) > 0.5).astype(jnp.float32)
    loss = jax.block_until_ready(dice_loss(x, t))
    ref = _dice_loss_ref(x, t)
    assert jnp.allclose(loss, ref, atol=1e-5, rtol=1e-5), (loss, ref)

    # Ragged case to exercise the in-kernel tail masking.
    xr = jax.random.normal(k3, (3, 5, 7, 9), dtype=jnp.float32)
    tr = (jax.random.uniform(k4, (3, 5, 7, 9)) > 0.5).astype(jnp.float32)
    loss_r = jax.block_until_ready(dice_loss(xr, tr))
    ref_r = _dice_loss_ref(xr, tr)
    assert jnp.allclose(loss_r, ref_r, atol=1e-5, rtol=1e-5), (loss_r, ref_r)

    print("KERNEL_OK")
</pallas_src>

<mosaic_0001>
module attributes {stable_mosaic.version = 11 : i64} {
  func.func @_dice_partial_kernel(%arg0: i32, %arg1: memref<16x128xf32, #tpu.memory_space<vmem>>, %arg2: memref<16x128xf32, #tpu.memory_space<vmem>>, %arg3: memref<1x8x128xf32, #tpu.memory_space<vmem>>, %arg4: memref<1x8x128xf32, #tpu.memory_space<vmem>>) attributes {dimension_semantics = [#tpu.dimension_semantics<parallel>], iteration_bounds = array<i64: 1>, scalar_prefetch = 0 : i64, scratch_operands = 0 : i64, tpu.core_type = #tpu.core_type<tc>, window_params = [{transform_indices = @transform_0, window_bounds = array<i64: 16, 128>}, {transform_indices = @transform_1, window_bounds = array<i64: 16, 128>}, {transform_indices = @transform_2, window_bounds = array<i64: 1, 8, 128>}, {transform_indices = @transform_3, window_bounds = array<i64: 1, 8, 128>}]} {
    %c0 = arith.constant 0 : index
    %c0_0 = arith.constant 0 : index
    %0 = vector.load %arg1[%c0, %c0_0] : memref<16x128xf32, #tpu.memory_space<vmem>>, vector<16x128xf32>
    %c0_1 = arith.constant 0 : index
    %c0_2 = arith.constant 0 : index
    %1 = vector.load %arg2[%c0_1, %c0_2] : memref<16x128xf32, #tpu.memory_space<vmem>>, vector<16x128xf32>
    %2 = arith.negf %0 : vector<16x128xf32>
    %3 = math.exp %2 : vector<16x128xf32>
    %cst = arith.constant 1.000000e+00 : f32
    %4 = vector.broadcast %cst : f32 to vector<16x128xf32>
    %5 = arith.addf %4, %3 : vector<16x128xf32>
    %6 = arith.divf %4, %5 : vector<16x128xf32>
    %7 = arith.mulf %6, %1 : vector<16x128xf32>
    %8 = vector.shape_cast %7 : vector<16x128xf32> to vector<2x8x128xf32>
    %cst_3 = arith.constant dense<0.000000e+00> : vector<8x128xf32>
    %9 = vector.multi_reduction <add>, %8, %cst_3 [0] : vector<2x8x128xf32> to vector<8x128xf32>
    %c0_4 = arith.constant 0 : index
    %c0_5 = arith.constant 0 : index
    %c0_6 = arith.constant 0 : index
    %10 = vector.load %arg3[%c0_4, %c0_5, %c0_6] : memref<1x8x128xf32, #tpu.memory_space<vmem>>, vector<1x8x128xf32>
    %11 = vector.shape_cast %10 : vector<1x8x128xf32> to vector<8x128xf32>
    %12 = vector.shape_cast %9 : vector<8x128xf32> to vector<1x8x128xf32>
    tpu.vector_store %arg3[%c0_4, %c0_5, %c0_6], %12 {strides = array<i32>} : memref<1x8x128xf32, #tpu.memory_space<vmem>>, vector<1x8x128xf32>,
    %13 = arith.addf %6, %1 : vector<16x128xf32>
    %14 = vector.shape_cast %13 : vector<16x128xf32> to vector<2x8x128xf32>
    %cst_7 = arith.constant dense<0.000000e+00> : vector<8x128xf32>
    %15 = vector.multi_reduction <add>, %14, %cst_7 [0] : vector<2x8x128xf32> to vector<8x128xf32>
    %c0_8 = arith.constant 0 : index
    %c0_9 = arith.constant 0 : index
    %c0_10 = arith.constant 0 : index
    %16 = vector.load %arg4[%c0_8, %c0_9, %c0_10] : memref<1x8x128xf32, #tpu.memory_space<vmem>>, vector<1x8x128xf32>
    %17 = vector.shape_cast %16 : vector<1x8x128xf32> to vector<8x128xf32>
    %18 = vector.shape_cast %15 : vector<8x128xf32> to vector<1x8x128xf32>
    tpu.vector_store %arg4[%c0_8, %c0_9, %c0_10], %18 {strides = array<i32>} : memref<1x8x128xf32, #tpu.memory_space<vmem>>, vector<1x8x128xf32>,
    return
  }
  func.func @transform_0(%arg0: i32) -> (i32, i32) {
    %c0_i32 = arith.constant 0 : i32
    %c0_i32_0 = arith.constant 0 : i32
    return %arg0, %c0_i32 : i32, i32
  }
  func.func @transform_1(%arg0: i32) -> (i32, i32) {
    %c0_i32 = arith.constant 0 : i32
    %c0_i32_0 = arith.constant 0 : i32
    return %arg0, %c0_i32 : i32, i32
  }
  func.func @transform_2(%arg0: i32) -> (i32, i32, i32) {
    %c0_i32 = arith.constant 0 : i32
    %c0_i32_0 = arith.constant 0 : i32
    %c0_i32_1 = arith.constant 0 : i32
    return %arg0, %c0_i32, %c0_i32_0 : i32, i32, i32
  }
  func.func @transform_3(%arg0: i32) -> (i32, i32, i32) {
    %c0_i32 = arith.constant 0 : i32
    %c0_i32_0 = arith.constant 0 : i32
    %c0_i32_1 = arith.constant 0 : i32
    return %arg0, %c0_i32, %c0_i32_0 : i32, i32, i32
  }
}

</mosaic_0001>

<bundles_post_ra>
// kernel: tpu_custom_call.1
= control target key start
LH: loop header
LB: loop body
LE: loop exit
PB: predicated region body
PF: predicated region fallthrough
CT: control target
= control target key end

     0   :  { %9 = vsyncpa [#allocation3], 0  ;;  %s283_s0 = inlined_call_operand.hbm [shape: f32[16,128], index: 0, kind: input, shape index: {}]   ;;  %s284_s1 = inlined_call_operand.hbm [shape: f32[16,128], index: 1, kind: input, shape index: {}]   ;;  %s285_s2 = inlined_call_operand.hbm [shape: f32[1,8,128], index: 2, kind: output, shape index: {0}]   ;;  %s286_s3 = inlined_call_operand.hbm [shape: f32[1,8,128], index: 3, kind: output, shape index: {1}]  }
   0x1   :  { %10 = vsyncpa [#allocation6], 0 }
   0x2   :  { %11 = vsyncpa [#allocation4], 0 }
   0x3   :  { %12 = vsyncpa [#allocation9], 0  ;;  %s209_s12 = smov [#allocation2]   ;;  %s113_s16 = scalar_lea.hbm %s283_s0, 256 }
   0x4   :  { %s18_s13 = sshll.u32 %s209_s12, 4  ;;  %p114_p0 = scmp.ne.s32.totalorder %s283_s0, %s113_s16  ;;  %s19_s13 = int_to_ptr.vmem [resolvable:$true] %s18_s13 }
   0x5   :  { %p117_p1 = scmp.lt.u32.totalorder %s113_s16, %s283_s0 }
   0x7   :  { %p119_p2 = pnand %p117_p1, %p114_p0 }
   0x9   :  { %122 = shalt.err (!%p119_p2)
}
   0xa   :  { %s123_s21 = scalar_lea.vmem %s19_s13, 256  ;;  %p128_p4 = scmp.lt.s32.totalorder %s19_s13, %s19_s13 }
   0xb   :  { %p124_p3 = scmp.ne.s32.totalorder %s19_s13, %s123_s21  ;;  %p129_p5 = scmp.lt.s32.totalorder %s123_s21, %s123_s21 }
   0xd   :  { %p130_p6 = por %p129_p5, %p128_p4 }
   0xf   :  { %p131_p7 = pnand %p130_p6, %p124_p3 }
  0x11   :  { %134 = shalt.err (!%p131_p7)
}
  0x12   :  { %s210_s22 = smov 128   ;;  %s211_s23 = smov 8  }
  0x13   :  { %24 = dma.hbm_to_vmem [thread:$0]  %s283_s0, 256, %s19_s13, [#allocation3], %s210_s22, %s210_s22, %s211_s23  }
  0x14   :  { %s212_s26 = smov [#allocation5]   ;;  %s135_s30 = scalar_lea.hbm %s284_s1, 256 }
  0x15   :  { %s30_s27 = sshll.u32 %s212_s26, 4  ;;  %p136_p8 = scmp.ne.s32.totalorder %s284_s1, %s135_s30  ;;  %s31_s27 = int_to_ptr.vmem [resolvable:$true] %s30_s27 }
  0x16   :  { %p139_p9 = scmp.lt.u32.totalorder %s135_s30, %s284_s1 }
  0x18   :  { %p141_p10 = pnand %p139_p9, %p136_p8 }
  0x1a   :  { %144 = shalt.err (!%p141_p10)
}
  0x1b   :  { %s145_s8 = scalar_lea.vmem %s31_s27, 256  ;;  %p150_p12 = scmp.lt.s32.totalorder %s31_s27, %s31_s27 }
  0x1c   :  { %p146_p11 = scmp.ne.s32.totalorder %s31_s27, %s145_s8  ;;  %p151_p13 = scmp.lt.s32.totalorder %s145_s8, %s145_s8 }
  0x1e   :  { %p152_p0 = por %p151_p13, %p150_p12 }
  0x20   :  { %p153_p1 = pnand %p152_p0, %p146_p11 }
  0x22   :  { %156 = shalt.err (!%p153_p1)
}
  0x23   :  { %36 = dma.hbm_to_vmem [thread:$0]  %s284_s1, 256, %s31_s27, [#allocation6], %s210_s22, %s210_s22, %s211_s23  }
  0x24   :  { %201 = dma.done.wait [#allocation3], 256  }
  0x25   :  { %202 = vsyncadd [#allocation3], 4294967040 }
  0x26   :  { %203 = dma.done.wait [#allocation6], 256  }
  0x27   :  { %204 = vsyncadd [#allocation6], 4294967040  ;;  %v43_v0 = vld [vmem:[#allocation2] sm:$0xff]  ;;  %v44_v1 = vld [vmem:[#allocation2 + $0x8] sm:$0xff]  ;;  %s213_s1 = smov [#allocation7]   ;;  %s214_s11 = smov [#allocation8]  }
  0x28   :  { %v97_v2 = vmul.f32 -1.442695, %v43_v0  ;;  %v98_v3 = vmul.f32 -1.442695, %v44_v1  ;;  %v45_v8 = vld [vmem:[#allocation5] sm:$0xff]  ;;  %v46_v9 = vld [vmem:[#allocation5 + $0x8] sm:$0xff] }
  0x29   :  { %s73_s10 = sshll.u32 %s213_s1, 4  ;;  %s83_s12 = sshll.u32 %s214_s11, 4  ;;  %s74_s10 = int_to_ptr.vmem [resolvable:$true] %s73_s10  ;;  %s84_s12 = int_to_ptr.vmem [resolvable:$true] %s83_s12 }
  0x2a   :  { %105 = vpow2.f32 %v97_v2  ;;  %s157_s13 = scalar_lea.vmem %s74_s10, 128  ;;  %p162_p3 = scmp.lt.s32.totalorder %s74_s10, %s74_s10 }
  0x2b   :  { %107 = vpow2.f32 %v98_v3  ;;  %p158_p2 = scmp.ne.s32.totalorder %s74_s10, %s157_s13  ;;  %p163_p4 = scmp.lt.s32.totalorder %s157_s13, %s157_s13 }
  0x2d   :  { %p164_p5 = por %p163_p4, %p162_p3 }
  0x2f   :  { %p165_p6 = pnand %p164_p5, %p158_p2 }
  0x34   :  { %v106_v4 = vpop.eup %105 }
  0x35   :  { %v108_v5 = vpop.eup %107  ;;  %v53_v6 = vadd.f32 1.0, %v106_v4 }
  0x36   :  { %v54_v7 = vadd.f32 1.0, %v108_v5 }
  0x37   :  { %109 = vrcp.f32 %v53_v6 }
  0x38   :  { %111 = vrcp.f32 %v54_v7 }
  0x41   :  { %v110_v10 = vpop.eup %109 }
  0x42   :  { %v112_v11 = vpop.eup %111  ;;  %v59_v12 = vmul.f32 %v110_v10, %v45_v8  ;;  %v63_v13 = vadd.f32 %v110_v10, %v45_v8 }
  0x43   :  { %v60_v14 = vmul.f32 %v112_v11, %v46_v9  ;;  %v64_v15 = vadd.f32 %v112_v11, %v46_v9 }
  0x45   :  { %v61_v16 = vadd.f32 %v60_v14, %v59_v12  ;;  %v65_v17 = vadd.f32 %v64_v15, %v63_v13 }
  0x47   :  { %62 = vst [vmem:[#allocation7] sm:$0xff] %v61_v16  ;;  %66 = vst [vmem:[#allocation8] sm:$0xff] %v65_v17 }
  0x48   :  { %168 = shalt.err (!%p165_p6)
}
  0x49   :  { %s169_s16 = scalar_lea.hbm %s285_s2, 128 }
  0x4a   :  { %p170_p7 = scmp.ne.s32.totalorder %s285_s2, %s169_s16  ;;  %p173_p8 = scmp.lt.u32.totalorder %s169_s16, %s285_s2 }
  0x4c   :  { %p175_p9 = pnand %p173_p8, %p170_p7 }
  0x4e   :  { %178 = shalt.err (!%p175_p9)
}
  0x4f   :  { %76 = dma.vmem_to_hbm [thread:$0]  %s74_s10, 128, %s285_s2, [#allocation4]  }
  0x50   :  { %s179_s23 = scalar_lea.vmem %s84_s12, 128  ;;  %p184_p11 = scmp.lt.s32.totalorder %s84_s12, %s84_s12 }
  0x51   :  { %p180_p10 = scmp.ne.s32.totalorder %s84_s12, %s179_s23  ;;  %p185_p12 = scmp.lt.s32.totalorder %s179_s23, %s179_s23 }
  0x53   :  { %p186_p13 = por %p185_p12, %p184_p11 }
  0x55   :  { %p187_p0 = pnand %p186_p13, %p180_p10 }
  0x57   :  { %190 = shalt.err (!%p187_p0)
}
  0x58   :  { %s191_s26 = scalar_lea.hbm %s286_s3, 128 }
  0x59   :  { %p192_p1 = scmp.ne.s32.totalorder %s286_s3, %s191_s26  ;;  %p195_p2 = scmp.lt.u32.totalorder %s191_s26, %s286_s3 }
  0x5b   :  { %p197_p3 = pnand %p195_p2, %p192_p1 }
  0x5d   :  { %200 = shalt.err (!%p197_p3)
}
  0x5e   :  { %86 = dma.vmem_to_hbm [thread:$0]  %s84_s12, 128, %s286_s3, [#allocation9]  }
  0x5f   :  { %205 = dma.done.wait [#allocation4], 128  }
  0x60   :  { %206 = vsyncadd [#allocation4], 4294967168 }
  0x61   :  { %207 = dma.done.wait [#allocation9], 128  }
  0x62   :  { %208 = vsyncadd [#allocation9], 4294967168 }
  0x63   :  { %93 = vsyncpa [#allocation3], 1 }
  0x64   :  { %94 = vsyncpa [#allocation6], 1 }
  0x65   :  { %95 = vsyncpa [#allocation4], 1 }
  0x66   :  { %96 = vsyncpa [#allocation9], 1 }

</bundles_post_ra>
